<compile_context>
chip_gen: v7x
topology: tpu7x:2x2x1
jax: 0.10.0
libtpu: 0.0.40
codegen_flags: <defaults>
</compile_context>

<pallas_src>
import functools

import jax
import jax.numpy as jnp
from jax import lax
from jax.experimental import pallas as pl
from jax.experimental.pallas import tpu as pltpu


def _dwconv_kernel(x_ref, wdw_ref, shift1_ref, wpw_ref, shift2_ref, out_ref,
                   xp_ref, *, W):
    # x_ref:      (Nb, Cin, H*W)            NCHW block, spatial flattened on lanes
    # wdw_ref:    (9, Cin, 1)               depthwise 3x3 taps (BN1 scale folded)
    # shift1_ref: (Cin, 1)                  folded BN1 shift
    # wpw_ref:    (Cout, Cin)               pointwise weights (BN2 scale folded)
    # shift2_ref: (Cout, 1)                 folded BN2 shift
    # out_ref:    (Nb, Cout, H*W)           NCHW output block
    # xp_ref:     (Nb, Cin, H*W + 2*(W+1))  flat halo scratch (VMEM)
    Nb, Cin, HW = x_ref.shape
    Cout = wpw_ref.shape[0]
    P = W + 1                                       # halo width on each side

    # Hoist the tiny weight / shift tensors once per grid step.
    wdw = wdw_ref[...]                              # (9, Cin, 1)
    shift1 = shift1_ref[...]                        # (Cin, 1)
    wpw = wpw_ref[...]                              # (Cout, Cin)
    shift2 = shift2_ref[...]                        # (Cout, 1)

    # Zero only the two halo strips, then drop the input into the interior.
    # (Re-done every step: with a "parallel" batch axis each core owns its scratch.)
    xp_ref[:, :, :P] = jnp.zeros((Nb, Cin, P), jnp.float32)
    xp_ref[:, :, P + HW:] = jnp.zeros((Nb, Cin, P), jnp.float32)
    xp_ref[:, :, P:P + HW] = x_ref[...]

    # Column index of every flattened pixel -> masks guarding row wrap-around for
    # the horizontal taps.  Vertical out-of-range reads land in the zeroed halo,
    # so no vertical mask is required.
    col = lax.broadcasted_iota(jnp.int32, (1, 1, HW), 2) % W
    ok_dx_neg = col >= 1                            # valid positions for dx = -1
    ok_dx_pos = col < (W - 1)                       # valid positions for dx = +1

    # Depthwise 3x3 (stride 1, pad 1, groups=Cin): nine shifted multiply-adds on
    # 256-lane-wide values (Cin on sublanes).  Each tap is a statically-offset
    # slice of the halo scratch (never hoist the whole scratch into a value).
    acc = jnp.zeros((Nb, Cin, HW), jnp.float32)
    for k in range(9):
        dy, dx = k // 3 - 1, k % 3 - 1
        s = dy * W + dx
        t = xp_ref[:, :, P + s:P + s + HW]          # t[..., i] = x[..., i+s] or 0
        if dx == -1:
            t = jnp.where(ok_dx_neg, t, 0.0)
        elif dx == 1:
            t = jnp.where(ok_dx_pos, t, 0.0)
        acc = acc + t * wdw[k]                      # (Cin, 1) broadcast over lanes

    # BN1 shift + ReLU.
    y = jnp.maximum(acc + shift1, 0.0)              # (Nb, Cin, HW)

    # Pointwise 1x1 conv as Cin broadcast-FMAs on the VPU: the K=Cin(=4),
    # N=Cout(=8) contraction is far too small to be worth MXU fill/drain latency.
    # BN2 scale is folded into wpw; add the shift and ReLU, store one dense slab.
    z = shift2                                      # (Cout, 1) -> broadcasts up
    for ci in range(Cin):
        z = z + wpw[:, ci:ci + 1] * y[:, ci:ci + 1, :]
    out_ref[...] = jnp.maximum(z, 0.0)              # (Nb, Cout, HW)


def dwconv(x_nchw, w_dw, bn1_scale, bn1_shift, w_pw, bn2_scale, bn2_shift):
    """DWConv forward (eval mode). w_dw: (3,3,Cin) depthwise, w_pw: (Cin,Cout)."""
    N, Cin, H, W = x_nchw.shape
    Cout = w_pw.shape[1]
    HW = H * W

    # NCHW with flattened spatial: contiguous, lane-dense input DMA and no
    # NCHW<->NHWC transposes anywhere in the wrapper.
    x_flat = x_nchw.reshape(N, Cin, HW).astype(jnp.float32)

    # Fold the eval-mode BN scales into the conv weights; only the per-channel
    # shifts (+ ReLU) remain inside the kernel.
    wdw_folded = (w_dw * bn1_scale).reshape(9, Cin, 1).astype(jnp.float32)
    shift1 = bn1_shift.reshape(Cin, 1).astype(jnp.float32)
    wpw_folded = (w_pw * bn2_scale).T.astype(jnp.float32)        # (Cout, Cin)
    shift2 = bn2_shift.reshape(Cout, 1).astype(jnp.float32)

    # Batch-block: amortize the ~0.35us per-grid-step overhead while keeping >=2
    # grid steps so both v7x TensorCores take work (neutral on v5e/v6e).
    Nb = N // 2 if (N >= 2 and N % 2 == 0) else 1
    grid = (N // Nb,)

    flops = int(N * HW * (2 * 9 * Cin + 2 * Cin * Cout))
    bytes_accessed = int(4 * (N * HW * (Cin + Cout)
                              + 9 * Cin + Cin * Cout + Cin + Cout))

    kernel = functools.partial(_dwconv_kernel, W=W)

    out_flat = pl.pallas_call(
        kernel,
        out_shape=jax.ShapeDtypeStruct((N, Cout, HW), jnp.float32),
        grid=grid,
        in_specs=[
            pl.BlockSpec((Nb, Cin, HW), lambda n: (n, 0, 0)),
            pl.BlockSpec((9, Cin, 1), lambda n: (0, 0, 0)),
            pl.BlockSpec((Cin, 1), lambda n: (0, 0)),
            pl.BlockSpec((Cout, Cin), lambda n: (0, 0)),
            pl.BlockSpec((Cout, 1), lambda n: (0, 0)),
        ],
        out_specs=pl.BlockSpec((Nb, Cout, HW), lambda n: (n, 0, 0)),
        scratch_shapes=[pltpu.VMEM((Nb, Cin, HW + 2 * (W + 1)), jnp.float32)],
        compiler_params=pltpu.CompilerParams(
            dimension_semantics=("parallel",)),
        cost_estimate=pl.CostEstimate(
            flops=flops, transcendentals=0, bytes_accessed=bytes_accessed),
    )(x_flat, wdw_folded, shift1, wpw_folded, shift2)

    # Output slab is already channel-major: just unflatten the spatial axis.
    return out_flat.reshape(N, Cout, H, W)


def reference(x_nchw, w_dw, bn1_scale, bn1_shift, w_pw, bn2_scale, bn2_shift):
    """Pure-JAX reference for the DWConv forward (eval-mode BN)."""
    N, Cin, H, W = x_nchw.shape
    x = jnp.transpose(x_nchw, (0, 2, 3, 1)).astype(jnp.float32)
    # depthwise 3x3 conv, groups=Cin, pad=1, no bias
    k_dw = w_dw.reshape(3, 3, 1, Cin)
    y = lax.conv_general_dilated(
        x, k_dw, window_strides=(1, 1), padding=((1, 1), (1, 1)),
        dimension_numbers=('NHWC', 'HWIO', 'NHWC'),
        feature_group_count=Cin)
    y = jnp.maximum(y * bn1_scale + bn1_shift, 0.0)
    # pointwise 1x1 conv, no bias
    z = jnp.einsum('nhwc,cd->nhwd', y, w_pw)
    z = jnp.maximum(z * bn2_scale + bn2_shift, 0.0)
    return jnp.transpose(z, (0, 3, 1, 2))


if __name__ == "__main__":
    # Small shapes consistent with the module: batch=2, in_chans=4, out_chans=8,
    # spatial 16x16 -> output (2, 8, 16, 16).
    N, Cin, Cout, H, W = 2, 4, 8, 16, 16
    eps = 1e-5

    key = jax.random.PRNGKey(0)
    ks = jax.random.split(key, 11)
    w_dw = jax.random.normal(ks[0], (3, 3, Cin), jnp.float32) * 0.3      # depthwise
    g1 = 1.0 + 0.1 * jax.random.normal(ks[1], (Cin,), jnp.float32)
    b1 = 0.1 * jax.random.normal(ks[2], (Cin,), jnp.float32)
    m1 = 0.1 * jax.random.normal(ks[3], (Cin,), jnp.float32)
    v1 = jax.random.uniform(ks[4], (Cin,), jnp.float32, minval=0.5, maxval=1.5)
    w_pw = jax.random.normal(ks[5], (Cin, Cout), jnp.float32) * 0.3      # pointwise
    g2 = 1.0 + 0.1 * jax.random.normal(ks[6], (Cout,), jnp.float32)
    b2 = 0.1 * jax.random.normal(ks[7], (Cout,), jnp.float32)
    m2 = 0.1 * jax.random.normal(ks[8], (Cout,), jnp.float32)
    v2 = jax.random.uniform(ks[9], (Cout,), jnp.float32, minval=0.5, maxval=1.5)
    x = jax.random.normal(ks[10], (N, Cin, H, W), jnp.float32)

    # eval-mode BN -> per-channel scale/shift
    bn1_scale = g1 / jnp.sqrt(v1 + eps)
    bn1_shift = b1 - m1 * bn1_scale
    bn2_scale = g2 / jnp.sqrt(v2 + eps)
    bn2_shift = b2 - m2 * bn2_scale

    out = jax.jit(dwconv)(x, w_dw, bn1_scale, bn1_shift, w_pw, bn2_scale, bn2_shift)
    out = jax.block_until_ready(out)

    ref = reference(x, w_dw, bn1_scale, bn1_shift, w_pw, bn2_scale, bn2_shift)
    assert out.shape == (N, Cout, H, W), out.shape
    assert jnp.allclose(out, ref, rtol=1e-3, atol=1e-3), \
        float(jnp.max(jnp.abs(out - ref)))

    print("KERNEL_OK")
</pallas_src>

<mosaic_0001>
module attributes {stable_mosaic.version = 11 : i64} {
  func.func @_dwconv_kernel(%arg0: i32, %arg1: memref<1x4x256xf32, #tpu.memory_space<vmem>>, %arg2: memref<9x4x1xf32, #tpu.memory_space<vmem>>, %arg3: memref<4x1xf32, #tpu.memory_space<vmem>>, %arg4: memref<8x4xf32, #tpu.memory_space<vmem>>, %arg5: memref<8x1xf32, #tpu.memory_space<vmem>>, %arg6: memref<1x8x256xf32, #tpu.memory_space<vmem>>, %arg7: memref<1x4x290xf32, #tpu.memory_space<vmem>>) attributes {dimension_semantics = [#tpu.dimension_semantics<parallel>], iteration_bounds = array<i64: 2>, scalar_prefetch = 0 : i64, scratch_operands = 1 : i64, tpu.core_type = #tpu.core_type<tc>, window_params = [{transform_indices = @transform_0, window_bounds = array<i64: 1, 4, 256>}, {pipeline_mode = #tpu.pipeline_mode<synchronous>, transform_indices = @transform_1, window_bounds = array<i64: 9, 4, 1>}, {pipeline_mode = #tpu.pipeline_mode<synchronous>, transform_indices = @transform_2, window_bounds = array<i64: 4, 1>}, {pipeline_mode = #tpu.pipeline_mode<synchronous>, transform_indices = @transform_3, window_bounds = array<i64: 8, 4>}, {pipeline_mode = #tpu.pipeline_mode<synchronous>, transform_indices = @transform_4, window_bounds = array<i64: 8, 1>}, {transform_indices = @transform_5, window_bounds = array<i64: 1, 8, 256>}]} {
    %c0 = arith.constant 0 : index
    %c0_0 = arith.constant 0 : index
    %c0_1 = arith.constant 0 : index
    %0 = vector.load %arg2[%c0, %c0_0, %c0_1] : memref<9x4x1xf32, #tpu.memory_space<vmem>>, vector<9x4x1xf32>
    %c0_2 = arith.constant 0 : index
    %c0_3 = arith.constant 0 : index
    %1 = vector.load %arg3[%c0_2, %c0_3] : memref<4x1xf32, #tpu.memory_space<vmem>>, vector<4x1xf32>
    %c0_4 = arith.constant 0 : index
    %c0_5 = arith.constant 0 : index
    %2 = vector.load %arg4[%c0_4, %c0_5] : memref<8x4xf32, #tpu.memory_space<vmem>>, vector<8x4xf32>
    %c0_6 = arith.constant 0 : index
    %c0_7 = arith.constant 0 : index
    %3 = vector.load %arg5[%c0_6, %c0_7] : memref<8x1xf32, #tpu.memory_space<vmem>>, vector<8x1xf32>
    %cst = arith.constant 0.000000e+00 : f32
    %4 = vector.broadcast %cst : f32 to vector<1x4x17xf32>
    %c0_8 = arith.constant 0 : index
    %c0_9 = arith.constant 0 : index
    %c0_10 = arith.constant 0 : index
    %5 = vector.load %arg7[%c0_8, %c0_9, %c0_10] : memref<1x4x290xf32, #tpu.memory_space<vmem>>, vector<1x4x17xf32>
    tpu.vector_store %arg7[%c0_8, %c0_9, %c0_10], %4 {strides = array<i32>} : memref<1x4x290xf32, #tpu.memory_space<vmem>>, vector<1x4x17xf32>,
    %cst_11 = arith.constant 0.000000e+00 : f32
    %6 = vector.broadcast %cst_11 : f32 to vector<1x4x17xf32>
    %c0_12 = arith.constant 0 : index
    %c0_13 = arith.constant 0 : index
    %c273 = arith.constant 273 : index
    %7 = vector.load %arg7[%c0_12, %c0_13, %c273] : memref<1x4x290xf32, #tpu.memory_space<vmem>>, vector<1x4x17xf32>
    tpu.vector_store %arg7[%c0_12, %c0_13, %c273], %6 {strides = array<i32>} : memref<1x4x290xf32, #tpu.memory_space<vmem>>, vector<1x4x17xf32>,
    %c0_14 = arith.constant 0 : index
    %c0_15 = arith.constant 0 : index
    %c0_16 = arith.constant 0 : index
    %8 = vector.load %arg1[%c0_14, %c0_15, %c0_16] : memref<1x4x256xf32, #tpu.memory_space<vmem>>, vector<1x4x256xf32>
    %c0_17 = arith.constant 0 : index
    %c0_18 = arith.constant 0 : index
    %c17 = arith.constant 17 : index
    %9 = vector.load %arg7[%c0_17, %c0_18, %c17] : memref<1x4x290xf32, #tpu.memory_space<vmem>>, vector<1x4x256xf32>
    tpu.vector_store %arg7[%c0_17, %c0_18, %c17], %8 {strides = array<i32>} : memref<1x4x290xf32, #tpu.memory_space<vmem>>, vector<1x4x256xf32>,
    %10 = tpu.iota {dimensions = array<i32: 2>} : vector<1x1x256xi32>
    %c16_i32 = arith.constant 16 : i32
    %c0_i32 = arith.constant 0 : i32
    %11 = arith.cmpi eq, %c16_i32, %c0_i32 : i32
    %c1_i32 = arith.constant 1 : i32
    %12 = arith.select %11, %c1_i32, %c16_i32 : i32
    %13 = vector.broadcast %12 : i32 to vector<1x1x256xi32>
    %14 = arith.remsi %10, %13 : vector<1x1x256xi32>
    %c0_i32_19 = arith.constant 0 : i32
    %15 = vector.broadcast %c0_i32_19 : i32 to vector<1x1x256xi32>
    %16 = arith.cmpi ne, %14, %15 : vector<1x1x256xi32>
    %c0_i32_20 = arith.constant 0 : i32
    %17 = vector.broadcast %c0_i32_20 : i32 to vector<1x1x256xi32>
    %18 = arith.cmpi slt, %14, %17 : vector<1x1x256xi32>
    %c0_i32_21 = arith.constant 0 : i32
    %19 = arith.cmpi slt, %12, %c0_i32_21 : i32
    %20 = vector.broadcast %19 : i1 to vector<1x1x256xi1>
    %21 = vector.broadcast %20 : vector<1x1x256xi1> to vector<1x1x256xi1>
    %22 = arith.xori %18, %21 : vector<1x1x256xi1>
    %23 = arith.andi %22, %16 : vector<1x1x256xi1>
    %24 = vector.broadcast %12 : i32 to vector<1x1x256xi32>
    %25 = arith.addi %14, %24 : vector<1x1x256xi32>
    %26 = arith.select %23, %25, %14 : vector<1x1x256xi1>, vector<1x1x256xi32>
    %c1_i32_22 = arith.constant 1 : i32
    %27 = vector.broadcast %c1_i32_22 : i32 to vector<1x1x256xi32>
    %28 = arith.cmpi sge, %26, %27 : vector<1x1x256xi32>
    %c15_i32 = arith.constant 15 : i32
    %29 = vector.broadcast %c15_i32 : i32 to vector<1x1x256xi32>
    %30 = arith.cmpi slt, %26, %29 : vector<1x1x256xi32>
    %cst_23 = arith.constant 0.000000e+00 : f32
    %31 = vector.broadcast %cst_23 : f32 to vector<1x4x256xf32>
    %c0_24 = arith.constant 0 : index
    %c0_25 = arith.constant 0 : index
    %c0_26 = arith.constant 0 : index
    %32 = vector.load %arg7[%c0_24, %c0_25, %c0_26] : memref<1x4x290xf32, #tpu.memory_space<vmem>>, vector<1x4x256xf32>
    %cst_27 = arith.constant 0.000000e+00 : f32
    %33 = vector.shape_cast %28 : vector<1x1x256xi1> to vector<1x1x256xi1>
    %34 = vector.broadcast %33 : vector<1x1x256xi1> to vector<1x4x256xi1>
    %35 = vector.broadcast %cst_27 : f32 to vector<1x4x256xf32>
    %36 = arith.select %34, %32, %35 : vector<1x4x256xi1>, vector<1x4x256xf32>
    %37 = vector.extract_strided_slice %0 {offsets = [0, 0, 0], sizes = [1, 4, 1], strides = [1, 1, 1]} : vector<9x4x1xf32> to vector<1x4x1xf32>
    %38 = vector.shape_cast %37 : vector<1x4x1xf32> to vector<4x1xf32>
    %39 = vector.shape_cast %38 : vector<4x1xf32> to vector<1x4x1xf32>
    %40 = vector.broadcast %39 : vector<1x4x1xf32> to vector<1x4x256xf32>
    %41 = arith.mulf %36, %40 : vector<1x4x256xf32>
    %42 = arith.addf %31, %41 : vector<1x4x256xf32>
    %c0_28 = arith.constant 0 : index
    %c0_29 = arith.constant 0 : index
    %c1 = arith.constant 1 : index
    %43 = vector.load %arg7[%c0_28, %c0_29, %c1] : memref<1x4x290xf32, #tpu.memory_space<vmem>>, vector<1x4x256xf32>
    %44 = vector.extract_strided_slice %0 {offsets = [1, 0, 0], sizes = [1, 4, 1], strides = [1, 1, 1]} : vector<9x4x1xf32> to vector<1x4x1xf32>
    %45 = vector.shape_cast %44 : vector<1x4x1xf32> to vector<4x1xf32>
    %46 = vector.shape_cast %45 : vector<4x1xf32> to vector<1x4x1xf32>
    %47 = vector.broadcast %46 : vector<1x4x1xf32> to vector<1x4x256xf32>
    %48 = arith.mulf %43, %47 : vector<1x4x256xf32>
    %49 = arith.addf %42, %48 : vector<1x4x256xf32>
    %c0_30 = arith.constant 0 : index
    %c0_31 = arith.constant 0 : index
    %c2 = arith.constant 2 : index
    %50 = vector.load %arg7[%c0_30, %c0_31, %c2] : memref<1x4x290xf32, #tpu.memory_space<vmem>>, vector<1x4x256xf32>
    %cst_32 = arith.constant 0.000000e+00 : f32
    %51 = vector.shape_cast %30 : vector<1x1x256xi1> to vector<1x1x256xi1>
    %52 = vector.broadcast %51 : vector<1x1x256xi1> to vector<1x4x256xi1>
    %53 = vector.broadcast %cst_32 : f32 to vector<1x4x256xf32>
    %54 = arith.select %52, %50, %53 : vector<1x4x256xi1>, vector<1x4x256xf32>
    %55 = vector.extract_strided_slice %0 {offsets = [2, 0, 0], sizes = [1, 4, 1], strides = [1, 1, 1]} : vector<9x4x1xf32> to vector<1x4x1xf32>
    %56 = vector.shape_cast %55 : vector<1x4x1xf32> to vector<4x1xf32>
    %57 = vector.shape_cast %56 : vector<4x1xf32> to vector<1x4x1xf32>
    %58 = vector.broadcast %57 : vector<1x4x1xf32> to vector<1x4x256xf32>
    %59 = arith.mulf %54, %58 : vector<1x4x256xf32>
    %60 = arith.addf %49, %59 : vector<1x4x256xf32>
    %c0_33 = arith.constant 0 : index
    %c0_34 = arith.constant 0 : index
    %c16 = arith.constant 16 : index
    %61 = vector.load %arg7[%c0_33, %c0_34, %c16] : memref<1x4x290xf32, #tpu.memory_space<vmem>>, vector<1x4x256xf32>
    %cst_35 = arith.constant 0.000000e+00 : f32
    %62 = vector.shape_cast %28 : vector<1x1x256xi1> to vector<1x1x256xi1>
    %63 = vector.broadcast %62 : vector<1x1x256xi1> to vector<1x4x256xi1>
    %64 = vector.broadcast %cst_35 : f32 to vector<1x4x256xf32>
    %65 = arith.select %63, %61, %64 : vector<1x4x256xi1>, vector<1x4x256xf32>
    %66 = vector.extract_strided_slice %0 {offsets = [3, 0, 0], sizes = [1, 4, 1], strides = [1, 1, 1]} : vector<9x4x1xf32> to vector<1x4x1xf32>
    %67 = vector.shape_cast %66 : vector<1x4x1xf32> to vector<4x1xf32>
    %68 = vector.shape_cast %67 : vector<4x1xf32> to vector<1x4x1xf32>
    %69 = vector.broadcast %68 : vector<1x4x1xf32> to vector<1x4x256xf32>
    %70 = arith.mulf %65, %69 : vector<1x4x256xf32>
    %71 = arith.addf %60, %70 : vector<1x4x256xf32>
    %c0_36 = arith.constant 0 : index
    %c0_37 = arith.constant 0 : index
    %c17_38 = arith.constant 17 : index
    %72 = vector.load %arg7[%c0_36, %c0_37, %c17_38] : memref<1x4x290xf32, #tpu.memory_space<vmem>>, vector<1x4x256xf32>
    %73 = vector.extract_strided_slice %0 {offsets = [4, 0, 0], sizes = [1, 4, 1], strides = [1, 1, 1]} : vector<9x4x1xf32> to vector<1x4x1xf32>
    %74 = vector.shape_cast %73 : vector<1x4x1xf32> to vector<4x1xf32>
    %75 = vector.shape_cast %74 : vector<4x1xf32> to vector<1x4x1xf32>
    %76 = vector.broadcast %75 : vector<1x4x1xf32> to vector<1x4x256xf32>
    %77 = arith.mulf %72, %76 : vector<1x4x256xf32>
    %78 = arith.addf %71, %77 : vector<1x4x256xf32>
    %c0_39 = arith.constant 0 : index
    %c0_40 = arith.constant 0 : index
    %c18 = arith.constant 18 : index
    %79 = vector.load %arg7[%c0_39, %c0_40, %c18] : memref<1x4x290xf32, #tpu.memory_space<vmem>>, vector<1x4x256xf32>
    %cst_41 = arith.constant 0.000000e+00 : f32
    %80 = vector.shape_cast %30 : vector<1x1x256xi1> to vector<1x1x256xi1>
    %81 = vector.broadcast %80 : vector<1x1x256xi1> to vector<1x4x256xi1>
    %82 = vector.broadcast %cst_41 : f32 to vector<1x4x256xf32>
    %83 = arith.select %81, %79, %82 : vector<1x4x256xi1>, vector<1x4x256xf32>
    %84 = vector.extract_strided_slice %0 {offsets = [5, 0, 0], sizes = [1, 4, 1], strides = [1, 1, 1]} : vector<9x4x1xf32> to vector<1x4x1xf32>
    %85 = vector.shape_cast %84 : vector<1x4x1xf32> to vector<4x1xf32>
    %86 = vector.shape_cast %85 : vector<4x1xf32> to vector<1x4x1xf32>
    %87 = vector.broadcast %86 : vector<1x4x1xf32> to vector<1x4x256xf32>
    %88 = arith.mulf %83, %87 : vector<1x4x256xf32>
    %89 = arith.addf %78, %88 : vector<1x4x256xf32>
    %c0_42 = arith.constant 0 : index
    %c0_43 = arith.constant 0 : index
    %c32 = arith.constant 32 : index
    %90 = vector.load %arg7[%c0_42, %c0_43, %c32] : memref<1x4x290xf32, #tpu.memory_space<vmem>>, vector<1x4x256xf32>
    %cst_44 = arith.constant 0.000000e+00 : f32
    %91 = vector.shape_cast %28 : vector<1x1x256xi1> to vector<1x1x256xi1>
    %92 = vector.broadcast %91 : vector<1x1x256xi1> to vector<1x4x256xi1>
    %93 = vector.broadcast %cst_44 : f32 to vector<1x4x256xf32>
    %94 = arith.select %92, %90, %93 : vector<1x4x256xi1>, vector<1x4x256xf32>
    %95 = vector.extract_strided_slice %0 {offsets = [6, 0, 0], sizes = [1, 4, 1], strides = [1, 1, 1]} : vector<9x4x1xf32> to vector<1x4x1xf32>
    %96 = vector.shape_cast %95 : vector<1x4x1xf32> to vector<4x1xf32>
    %97 = vector.shape_cast %96 : vector<4x1xf32> to vector<1x4x1xf32>
    %98 = vector.broadcast %97 : vector<1x4x1xf32> to vector<1x4x256xf32>
    %99 = arith.mulf %94, %98 : vector<1x4x256xf32>
    %100 = arith.addf %89, %99 : vector<1x4x256xf32>
    %c0_45 = arith.constant 0 : index
    %c0_46 = arith.constant 0 : index
    %c33 = arith.constant 33 : index
    %101 = vector.load %arg7[%c0_45, %c0_46, %c33] : memref<1x4x290xf32, #tpu.memory_space<vmem>>, vector<1x4x256xf32>
    %102 = vector.extract_strided_slice %0 {offsets = [7, 0, 0], sizes = [1, 4, 1], strides = [1, 1, 1]} : vector<9x4x1xf32> to vector<1x4x1xf32>
    %103 = vector.shape_cast %102 : vector<1x4x1xf32> to vector<4x1xf32>
    %104 = vector.shape_cast %103 : vector<4x1xf32> to vector<1x4x1xf32>
    %105 = vector.broadcast %104 : vector<1x4x1xf32> to vector<1x4x256xf32>
    %106 = arith.mulf %101, %105 : vector<1x4x256xf32>
    %107 = arith.addf %100, %106 : vector<1x4x256xf32>
    %c0_47 = arith.constant 0 : index
    %c0_48 = arith.constant 0 : index
    %c34 = arith.constant 34 : index
    %108 = vector.load %arg7[%c0_47, %c0_48, %c34] : memref<1x4x290xf32, #tpu.memory_space<vmem>>, vector<1x4x256xf32>
    %cst_49 = arith.constant 0.000000e+00 : f32
    %109 = vector.shape_cast %30 : vector<1x1x256xi1> to vector<1x1x256xi1>
    %110 = vector.broadcast %109 : vector<1x1x256xi1> to vector<1x4x256xi1>
    %111 = vector.broadcast %cst_49 : f32 to vector<1x4x256xf32>
    %112 = arith.select %110, %108, %111 : vector<1x4x256xi1>, vector<1x4x256xf32>
    %113 = vector.extract_strided_slice %0 {offsets = [8, 0, 0], sizes = [1, 4, 1], strides = [1, 1, 1]} : vector<9x4x1xf32> to vector<1x4x1xf32>
    %114 = vector.shape_cast %113 : vector<1x4x1xf32> to vector<4x1xf32>
    %115 = vector.shape_cast %114 : vector<4x1xf32> to vector<1x4x1xf32>
    %116 = vector.broadcast %115 : vector<1x4x1xf32> to vector<1x4x256xf32>
    %117 = arith.mulf %112, %116 : vector<1x4x256xf32>
    %118 = arith.addf %107, %117 : vector<1x4x256xf32>
    %119 = vector.shape_cast %1 : vector<4x1xf32> to vector<1x4x1xf32>
    %120 = vector.broadcast %119 : vector<1x4x1xf32> to vector<1x4x256xf32>
    %121 = arith.addf %118, %120 : vector<1x4x256xf32>
    %cst_50 = arith.constant 0.000000e+00 : f32
    %122 = vector.broadcast %cst_50 : f32 to vector<1x4x256xf32>
    %123 = arith.maximumf %121, %122 : vector<1x4x256xf32>
    %124 = vector.extract_strided_slice %2 {offsets = [0, 0], sizes = [8, 1], strides = [1, 1]} : vector<8x4xf32> to vector<8x1xf32>
    %125 = vector.extract_strided_slice %123 {offsets = [0, 0, 0], sizes = [1, 1, 256], strides = [1, 1, 1]} : vector<1x4x256xf32> to vector<1x1x256xf32>
    %126 = vector.shape_cast %124 : vector<8x1xf32> to vector<1x8x1xf32>
    %127 = vector.broadcast %126 : vector<1x8x1xf32> to vector<1x8x256xf32>
    %128 = vector.broadcast %125 : vector<1x1x256xf32> to vector<1x8x256xf32>
    %129 = arith.mulf %127, %128 : vector<1x8x256xf32>
    %130 = vector.shape_cast %3 : vector<8x1xf32> to vector<1x8x1xf32>
    %131 = vector.broadcast %130 : vector<1x8x1xf32> to vector<1x8x256xf32>
    %132 = arith.addf %131, %129 : vector<1x8x256xf32>
    %133 = vector.extract_strided_slice %2 {offsets = [0, 1], sizes = [8, 1], strides = [1, 1]} : vector<8x4xf32> to vector<8x1xf32>
    %134 = vector.extract_strided_slice %123 {offsets = [0, 1, 0], sizes = [1, 1, 256], strides = [1, 1, 1]} : vector<1x4x256xf32> to vector<1x1x256xf32>
    %135 = vector.shape_cast %133 : vector<8x1xf32> to vector<1x8x1xf32>
    %136 = vector.broadcast %135 : vector<1x8x1xf32> to vector<1x8x256xf32>
    %137 = vector.broadcast %134 : vector<1x1x256xf32> to vector<1x8x256xf32>
    %138 = arith.mulf %136, %137 : vector<1x8x256xf32>
    %139 = arith.addf %132, %138 : vector<1x8x256xf32>
    %140 = vector.extract_strided_slice %2 {offsets = [0, 2], sizes = [8, 1], strides = [1, 1]} : vector<8x4xf32> to vector<8x1xf32>
    %141 = vector.extract_strided_slice %123 {offsets = [0, 2, 0], sizes = [1, 1, 256], strides = [1, 1, 1]} : vector<1x4x256xf32> to vector<1x1x256xf32>
    %142 = vector.shape_cast %140 : vector<8x1xf32> to vector<1x8x1xf32>
    %143 = vector.broadcast %142 : vector<1x8x1xf32> to vector<1x8x256xf32>
    %144 = vector.broadcast %141 : vector<1x1x256xf32> to vector<1x8x256xf32>
    %145 = arith.mulf %143, %144 : vector<1x8x256xf32>
    %146 = arith.addf %139, %145 : vector<1x8x256xf32>
    %147 = vector.extract_strided_slice %2 {offsets = [0, 3], sizes = [8, 1], strides = [1, 1]} : vector<8x4xf32> to vector<8x1xf32>
    %148 = vector.extract_strided_slice %123 {offsets = [0, 3, 0], sizes = [1, 1, 256], strides = [1, 1, 1]} : vector<1x4x256xf32> to vector<1x1x256xf32>
    %149 = vector.shape_cast %147 : vector<8x1xf32> to vector<1x8x1xf32>
    %150 = vector.broadcast %149 : vector<1x8x1xf32> to vector<1x8x256xf32>
    %151 = vector.broadcast %148 : vector<1x1x256xf32> to vector<1x8x256xf32>
    %152 = arith.mulf %150, %151 : vector<1x8x256xf32>
    %153 = arith.addf %146, %152 : vector<1x8x256xf32>
    %cst_51 = arith.constant 0.000000e+00 : f32
    %154 = vector.broadcast %cst_51 : f32 to vector<1x8x256xf32>
    %155 = arith.maximumf %153, %154 : vector<1x8x256xf32>
    %c0_52 = arith.constant 0 : index
    %c0_53 = arith.constant 0 : index
    %c0_54 = arith.constant 0 : index
    %156 = vector.load %arg6[%c0_52, %c0_53, %c0_54] : memref<1x8x256xf32, #tpu.memory_space<vmem>>, vector<1x8x256xf32>
    tpu.vector_store %arg6[%c0_52, %c0_53, %c0_54], %155 {strides = array<i32>} : memref<1x8x256xf32, #tpu.memory_space<vmem>>, vector<1x8x256xf32>,
    return
  }
  func.func @transform_0(%arg0: i32) -> (i32, i32, i32) {
    %c0_i32 = arith.constant 0 : i32
    %c0_i32_0 = arith.constant 0 : i32
    %c0_i32_1 = arith.constant 0 : i32
    return %arg0, %c0_i32, %c0_i32_0 : i32, i32, i32
  }
  func.func @transform_1(%arg0: i32) -> (i32, i32, i32) {
    %c0_i32 = arith.constant 0 : i32
    %c0_i32_0 = arith.constant 0 : i32
    %c0_i32_1 = arith.constant 0 : i32
    %c0_i32_2 = arith.constant 0 : i32
    return %c0_i32, %c0_i32_0, %c0_i32_1 : i32, i32, i32
  }
  func.func @transform_2(%arg0: i32) -> (i32, i32) {
    %c0_i32 = arith.constant 0 : i32
    %c0_i32_0 = arith.constant 0 : i32
    %c0_i32_1 = arith.constant 0 : i32
    return %c0_i32, %c0_i32_0 : i32, i32
  }
  func.func @transform_3(%arg0: i32) -> (i32, i32) {
    %c0_i32 = arith.constant 0 : i32
    %c0_i32_0 = arith.constant 0 : i32
    %c0_i32_1 = arith.constant 0 : i32
    return %c0_i32, %c0_i32_0 : i32, i32
  }
  func.func @transform_4(%arg0: i32) -> (i32, i32) {
    %c0_i32 = arith.constant 0 : i32
    %c0_i32_0 = arith.constant 0 : i32
    %c0_i32_1 = arith.constant 0 : i32
    return %c0_i32, %c0_i32_0 : i32, i32
  }
  func.func @transform_5(%arg0: i32) -> (i32, i32, i32) {
    %c0_i32 = arith.constant 0 : i32
    %c0_i32_0 = arith.constant 0 : i32
    %c0_i32_1 = arith.constant 0 : i32
    return %arg0, %c0_i32, %c0_i32_0 : i32, i32, i32
  }
}

</mosaic_0001>

<bundles_post_ra>
// kernel: dwconv.1
= control target key start
LH: loop header
LB: loop body
LE: loop exit
PB: predicated region body
PF: predicated region fallthrough
CT: control target
= control target key end

     0   :  { %s774_s18 = smov 0   ;;  %s948_s0 = inlined_call_operand.vmem [shape: f32[2,4,256], index: 0, kind: input, shape index: {}]   ;;  %s949_s1 = inlined_call_operand.vmem [shape: f32[9,4,1], index: 1, kind: input, shape index: {}]   ;;  %s950_s2 = inlined_call_operand.vmem [shape: f32[4,1], index: 2, kind: input, shape index: {}]   ;;  %s951_s3 = inlined_call_operand.vmem [shape: f32[8,4], index: 3, kind: input, shape index: {}]   ;;  %s952_s4 = inlined_call_operand.vmem [shape: f32[8,1], index: 4, kind: input, shape index: {}]   ;;  %s953_s5 = inlined_call_operand.vmem [shape: f32[2,8,256], index: 5, kind: output, shape index: {}]  }
   0x1 LB: > { %s678_s19 = sadd.s32 4294967295, %s727_s18   ;;  %p682_p0 = scmp.ge.s32.totalorder %s727_s18, 1  ;;  %s727_s18 = sphi %s774_s18, %s15_s18  }
   0x2   : > { %p187_p1 = scmp.lt.s32.totalorder %s727_s18, 3 }
   0x4   : > { %p188_p2 = pnand %p682_p0, %p187_p1 }
   0x5   : > { %v229_v0 = vld [vmem:[%s949_s1 + $0x10] sm:$0xf] (!%p188_p2)  ;;  %p215_p3 = scmp.lt.s32.totalorder (!%p188_p2), %s678_s19, 1  ;;  %v729_v1 = vmov (!%p188_p2), 0   ;;  %vm237_vm0 = vcmask (!%p188_p2), 134144   ;;  %v730_v3 = vmov (!%p188_p2), 0.0   ;;  %v255_v13 = vlaneseq (!%p188_p2) }
   0x6   : > { %191 = sbr.rel (%p188_p2) target bundleno = 335 (0x14f), region = 40  ;;  %715 = vset.pattern.permute.xlu1 (!%p188_p2), %v729_v1  ;;  %714 = vset.pattern.permute.xlu0 (!%p188_p2), %v729_v1  ;;  %v232_v2 = vld [vmem:[%s949_s1 + $0x1c] sm:$0xf] (!%p188_p2)  ;;  %238 = vst.msk [vmem:[#allocation2] sm:$0xf] (!%p188_p2), %vm237_vm0, %v730_v3  ;;  %vm239_vm1 = vcmask (!%p188_p2), 273544  }
   0x7   : > { %399 = vperm.xlu1 (!%p188_p2), %715, %v229_v0   ;;  %240 = vst.msk [vmem:[#allocation2 + $0x8] sm:$0xf] (!%p188_p2), %vm239_vm1, %v730_v3  ;;  %s731_s28 = smov (!%p188_p2), 17   ;;  %v225_v5 = vld [vmem:[%s949_s1] sm:$0xf] (!%p188_p2)  ;;  %vm250_vm2 = vcmask (!%p188_p2), 1043592  }
   0x8   : > { %v226_v6 = vld [vmem:[%s949_s1 + $0x4] sm:$0xf] (!%p188_p2)  ;;  %v228_v7 = vld [vmem:[%s949_s1 + $0xc] sm:$0xf] (!%p188_p2)  ;;  %v227_v8 = vld [vmem:[%s949_s1 + $0x8] sm:$0xf] (!%p188_p2) }
   0x9   : > { %v233_v9 = vld [vmem:[%s949_s1 + $0x20] sm:$0xf] (!%p188_p2)  ;;  %v230_v10 = vld [vmem:[%s949_s1 + $0x14] sm:$0xf] (!%p188_p2)  ;;  %v231_v12 = vld [vmem:[%s949_s1 + $0x18] sm:$0xf] (!%p188_p2) }
   0xa   : > { %v234_v11 = vld [vmem:[%s950_s2] sm:$0xf] (!%p188_p2)  ;;  %vm251_vm3 = vcmask (!%p188_p2), 1047556   ;;  %v819_v14 = vand.u32 (!%p188_p2), 127, %v255_v13  ;;  %vm246_vm4 = vcmask (!%p188_p2), 138240   ;;  %s733_s22 = smov (!%p188_p2), 112  }
   0xb   : > { %485 = vperm.xlu1 (!%p188_p2), %715, %v232_v2   ;;  %vm252_vm5 = vmor (!%p188_p2), %vm251_vm3, %vm250_vm2  ;;  %v732_v24 = vmov (!%p188_p2), 839922192   ;;  %s734_s23 = smov (!%p188_p2), 126   ;;  %v853_v34 = vshrl.u32 (!%p188_p2), %v255_v13, 7  ;;  %s736_s25 = smov (!%p188_p2), 96   ;;  %v236_v55 = vld [vmem:[%s952_s4] sm:$0xff] (!%p188_p2) }
   0xc   : > { %v823_v18 = vadd.s32 (!%p188_p2), 128, %v819_v14  ;;  %v262_v19 = vand.u32 (!%p188_p2), 15, %v819_v14  ;;  %v312_v25 = vunpack.c.l.s4 (!%p188_p2), %v732_v24  ;;  %s737_s26 = smov (!%p188_p2), 94   ;;  %s740_s29 = smov (!%p188_p2), 95   ;;  %v235_v56 = vld [vmem:[%s951_s3] sm:$0xff] (!%p188_p2)  ;;  %v741_v57 = vmov (!%p188_p2), 2  }
   0xd   : > { %s963_s19 = smov (!%p215_p3, %s678_s19), 1  ;;  %v742_v58 = vmov 1   ;;  %v743_v59 = vmov 3   ;;  %vm352_vm8 = vcmask 1031168   ;;  %vm379_vm9 = vcmask 916480  }
   0xe   : > { %s689_s24 = sshll.u32 %s963_s19, 3  ;;  %v269_v20 = vand.u32 15, %v823_v18  ;;  %vm829_vm6 = vcmp.ge.s32.totalorder %v262_v19, 1  ;;  %v313_v33 = vunpack.c.0.s8 %v312_v25  ;;  %vm889_vm10 = vcmp.lt.s32.totalorder %v262_v19, 15  ;;  %s690_s9 = sshll.u32 %s963_s19, 4 }
   0xf   : > { %s219_s27 = scalar_lea.vmem %s948_s0, %s689_s24  ;;  %298 = vperm.xlu1 %715, %v225_v5   ;;  %s735_s24 = smov 110   ;;  %vm438_vm12 = vcmask 900096   ;;  %vm330_vm13 = vcmask 1039360   ;;  %vm465_vm14 = vcmask 785408   ;;  %vm420_vm15 = vcmask 908288  }
  0x10   : > { %v241_v4 = vld [vmem:[%s219_s27] sm:$0xff]  ;;  %vm839_vm7 = vcmp.ge.s32.totalorder %v269_v20, 1  ;;  %v316_v36 = vsub.s32 %v313_v33, %v853_v34  ;;  %s738_s27 = smov 127   ;;  %vm895_vm11 = vcmp.lt.s32.totalorder %v269_v20, 15  ;;  %vm506_vm1 = vcmask 777216   ;;  %s224_s12 = scalar_lea.vmem %s953_s5, %s690_s9 }
  0x11   : > { %243 = vrot.lane.b32.xlu0 %v241_v4, %s731_s28  ;;  %s739_s28 = smov 111   ;;  %v556_v25 = vsub.s32 0, %v853_v34 }
  0x13   : > { %388 = vperm.xlu1 %715, %v228_v7  }
  0x15   : > { %309 = vperm.xlu0 %714, %v226_v6  }
  0x17   : > { %533 = vperm.xlu1 %715, %v233_v9  }
  0x19   : > { %361 = vperm.xlu0 %714, %v227_v8  }
  0x1b   : > { %542 = vperm.xlu1 %715, %v234_v11  }
  0x1d   : > { %447 = vperm.xlu0 %714, %v230_v10  }
  0x21   : > { %474 = vperm.xlu0 %714, %v231_v12  }
  0x83   : > { %v244_v15 = vpop.permute.xlu0 %243 }
  0x84   : > { %v245_v16 = vrot.slane %v244_v15, 4 }
  0x86   : > { %v247_v17 = vsel %vm246_vm4, %v245_v16, %v244_v15  ;;  %254 = vst.msk [vmem:[#allocation2 + $0x8] sm:$0xf] %vm237_vm0, %v245_v16  ;;  %v400_v38 = vpop.permute.xlu1 %399  ;;  %vm524_vm0 = vcmask 769024  }
  0x87   : > { %253 = vst.msk [vmem:[#allocation2] sm:$0xff] %vm252_vm5, %v247_v17  ;;  %v407_v40 = vrot.slane %v400_v38, %v316_v36 }
  0x8a   : > { %v486_v45 = vpop.permute.xlu1 %485 }
  0x8b   : > { %v493_v47 = vrot.slane %v486_v45, %v316_v36 }
  0x8d   : > { %v369_v22 = vld [vmem:[#allocation2 + $0x8] sm:$0xf] }
  0x8e   : > { %v338_v23 = vld [vmem:[#allocation2 + $0x8] sm:$0xf]  ;;  %v833_v26 = vld [vmem:[#allocation2] sm:$0xff]  ;;  %377 = vrot.lane.b32.xlu1 %v369_v22, %s733_s22  ;;  %v299_v60 = vpop.permute.xlu1 %298 }
  0x8f   : > { %350 = vrot.lane.b32.xlu0 %v338_v23, %s734_s23  ;;  %v845_v28 = vcombine.high %v833_v26, %v833_v26  ;;  %v294_v29 = vsel %vm829_vm6, %v833_v26, 0.0  ;;  %v428_v30 = vld [vmem:[#allocation2 + $0x8] sm:$0xf]  ;;  %v409_v46 = vmul.f32 %v407_v40, %v833_v26  ;;  %v495_v48 = vmul.f32 %v493_v47, %v833_v26 }
  0x90   : > { %v455_v31 = vld [vmem:[#allocation2 + $0x8] sm:$0xf]  ;;  %v301_v14 = vmul.f32 %v299_v60, %v294_v29 }
  0x91   : > { %v295_v32 = vsel %vm839_vm7, %v845_v28, 0.0  ;;  %v306_v39 = vld [vmem:[#allocation2 + $0x8] sm:$0xf]  ;;  %v413_v50 = vcombine.high %v409_v46, %v409_v46  ;;  %v499_v54 = vcombine.high %v495_v48, %v495_v48 }
  0x92   : > { %436 = vrot.lane.b32.xlu1 %v428_v30, %s735_s24  ;;  %v396_v42 = vld [vmem:[#allocation2 + $0x8] sm:$0xf]  ;;  %v389_v61 = vpop.permute.xlu1 %388  ;;  %v302_v18 = vmul.f32 %v299_v60, %v295_v32 }
  0x93   : > { %463 = vrot.lane.b32.xlu0 %v455_v31, %s736_s25  ;;  %v410_v43 = vmul.f32 %v407_v40, %v396_v42  ;;  %v514_v51 = vld [vmem:[#allocation2 + $0x8] sm:$0xf] }
  0x94   : > { %v310_v35 = vpop.permute.xlu0 %309  ;;  %v482_v52 = vld [vmem:[#allocation2 + $0x8] sm:$0xf] }
  0x95   : > { %v317_v37 = vrot.slane %v310_v35, %v316_v36  ;;  %v496_v53 = vmul.f32 %v493_v47, %v482_v52 }
  0x96   : > { %373 = vrot.lane.b32.xlu1 %v833_v26, %s733_s22  ;;  %v879_v63 = vpop.permute.xlu1 %533 }
  0x97   : > { %346 = vrot.lane.b32.xlu0 %v833_v26, %s734_s23  ;;  %v320_v41 = vmul.f32 %v317_v37, %v306_v39  ;;  %v319_v44 = vmul.f32 %v833_v26, %v317_v37 }
  0x98   : > { %v362_v62 = vpop.permute.xlu0 %361 }
  0x99   : > { %v323_v49 = vcombine.high %v319_v44, %v319_v44 }
  0x9a   : > { %432 = vrot.lane.b32.xlu1 %v833_v26, %s735_s24  ;;  %v883_v1 = vpop.permute.xlu1 %542 }
  0x9b   : > { %459 = vrot.lane.b32.xlu0 %v833_v26, %s736_s25 }
  0x9c   : > { %v881_v0 = vpop.permute.xlu0 %447 }
  0x9e   : > { %328 = vrot.lane.b32.xlu1 %v320_v41, %s738_s27 }
  0x9f   : > { %518 = vrot.lane.b32.xlu0 %v833_v26, %s737_s26 }
  0xa0   : > { %v885_v2 = vpop.permute.xlu0 %474 }
  0xa2   : > { %348 = vrot.lane.b32.xlu1 %v845_v28, %s734_s23 }
  0xa3   : > { %418 = vrot.lane.b32.xlu0 %v410_v43, %s739_s28 }
  0xa6   : > { %324 = vrot.lane.b32.xlu1 %v319_v44, %s738_s27 }
  0xa7   : > { %375 = vrot.lane.b32.xlu0 %v845_v28, %s733_s22 }
  0xaa   : > { %461 = vrot.lane.b32.xlu1 %v845_v28, %s736_s25 }
  0xab   : > { %434 = vrot.lane.b32.xlu0 %v845_v28, %s735_s24 }
  0xae   : > { %520 = vrot.lane.b32.xlu1 %v845_v28, %s737_s26 }
  0xaf   : > { %414 = vrot.lane.b32.xlu0 %v409_v46, %s739_s28 }
  0xb2   : > { %500 = vrot.lane.b32.xlu1 %v495_v48, %s740_s29 }
  0xb3   : > { %326 = vrot.lane.b32.xlu0 %v323_v49, %s738_s27 }
  0xb6   : > { %416 = vrot.lane.b32.xlu1 %v413_v50, %s739_s28 }
  0xb7   : > { %522 = vrot.lane.b32.xlu0 %v514_v51, %s737_s26 }
  0xba   : > { %504 = vrot.lane.b32.xlu1 %v496_v53, %s740_s29 }
  0xbb   : > { %502 = vrot.lane.b32.xlu0 %v499_v54, %s740_s29 }
  0xbe   : > { %566 = vperm.xlu1 %715, %v236_v55  }
  0xbf   : > { %551 = vperm.xlu0 %714, %v235_v56  }
  0xc2   : > { %717 = vset.pattern.permute.xlu1 %v741_v57 }
  0xc3   : > { %716 = vset.pattern.permute.xlu0 %v742_v58  ;;  %588 = vperm.xlu1 %717, %v235_v56  }
  0xc4   : > { %572 = vperm.xlu0 %716, %v235_v56  }
  0xc7   : > { %718 = vset.pattern.permute.xlu1 %v743_v59 }
  0xc8   : > { %719 = vset.pattern.permute.xlu0 %v743_v59  ;;  %604 = vperm.xlu1 %718, %v235_v56  }
 0x100   : > { %v378_v3 = vpop.permute.xlu1 %377 }
 0x101   : > { %v351_v4 = vpop.permute.xlu0 %350 }
 0x104   : > { %v437_v5 = vpop.permute.xlu1 %436 }
 0x105   : > { %v464_v6 = vpop.permute.xlu0 %463 }
 0x108   : > { %v374_v7 = vpop.permute.xlu1 %373 }
 0x109   : > { %v347_v8 = vpop.permute.xlu0 %346 }
 0x10c   : > { %v433_v9 = vpop.permute.xlu1 %432 }
 0x10d   : > { %v460_v10 = vpop.permute.xlu0 %459 }
 0x110   : > { %v329_v11 = vpop.permute.xlu1 %328 }
 0x111   : > { %v519_v12 = vpop.permute.xlu0 %518 }
 0x114   : > { %v349_v13 = vpop.permute.xlu1 %348 }
 0x115   : > { %v419_v15 = vpop.permute.xlu0 %418  ;;  %v353_v30 = vsel %vm352_vm8, %v347_v8, %v349_v13  ;;  %v354_v31 = vsel %vm352_vm8, %v349_v13, %v351_v4 }
 0x116   : > { %v357_v19 = vsel %vm889_vm10, %v353_v30, 0.0  ;;  %v358_v20 = vsel %vm895_vm11, %v354_v31, 0.0 }
 0x117   : > { %v364_v42 = vmul.f32 %v362_v62, %v357_v19  ;;  %v365_v43 = vmul.f32 %v362_v62, %v358_v20 }
 0x118   : > { %v325_v16 = vpop.permute.xlu1 %324 }
 0x119   : > { %v376_v17 = vpop.permute.xlu0 %375 }
 0x11a   : > { %v380_v36 = vsel %vm379_vm9, %v374_v7, %v376_v17  ;;  %v381_v37 = vsel %vm379_vm9, %v376_v17, %v378_v3 }
 0x11b   : > { %v384_v38 = vsel %vm829_vm6, %v380_v36, 0.0  ;;  %v385_v39 = vsel %vm839_vm7, %v381_v37, 0.0 }
 0x11c   : > { %v462_v22 = vpop.permute.xlu1 %461  ;;  %v391_v46 = vmul.f32 %v389_v61, %v384_v38  ;;  %v392_v47 = vmul.f32 %v389_v61, %v385_v39  ;;  %v577_v38 = vsub.s32 1, %v853_v34 }
 0x11d   : > { %v435_v23 = vpop.permute.xlu0 %434  ;;  %v466_v48 = vsel %vm465_vm14, %v460_v10, %v462_v22  ;;  %v467_v49 = vsel %vm465_vm14, %v462_v22, %v464_v6 }
 0x11e   : > { %v439_v40 = vsel %vm438_vm12, %v433_v9, %v435_v23  ;;  %v440_v41 = vsel %vm438_vm12, %v435_v23, %v437_v5  ;;  %v470_v56 = vsel %vm829_vm6, %v466_v48, 0.0  ;;  %v471_v57 = vsel %vm839_vm7, %v467_v49, 0.0 }
 0x11f   : > { %v443_v50 = vsel %vm889_vm10, %v439_v40, 0.0  ;;  %v444_v51 = vsel %vm895_vm11, %v440_v41, 0.0  ;;  %v477_v21 = vmul.f32 %v885_v2, %v470_v56  ;;  %v478_v27 = vmul.f32 %v885_v2, %v471_v57 }
 0x120   : > { %v521_v33 = vpop.permute.xlu1 %520  ;;  %v450_v60 = vmul.f32 %v881_v0, %v443_v50  ;;  %v451_v61 = vmul.f32 %v881_v0, %v444_v51 }
 0x121   : > { %v415_v35 = vpop.permute.xlu0 %414  ;;  %v525_v4 = vsel %vm524_vm0, %v519_v12, %v521_v33 }
 0x122   : > { %v529_v0 = vsel %vm889_vm10, %v525_v4, 0.0 }
 0x123   : > { %v536_v22 = vmul.f32 %v879_v63, %v529_v0 }
 0x124   : > { %v501_v26 = vpop.permute.xlu1 %500 }
 0x125   : > { %v327_v29 = vpop.permute.xlu0 %326 }
 0x126   : > { %v331_v28 = vsel %vm330_vm13, %v325_v16, %v327_v29  ;;  %v332_v32 = vsel %vm330_vm13, %v327_v29, %v329_v11 }
 0x127   : > { %v335_v44 = vadd.f32 %v331_v28, %v301_v14  ;;  %v336_v45 = vadd.f32 %v332_v32, %v302_v18 }
 0x128   : > { %v417_v54 = vpop.permute.xlu1 %416 }
 0x129   : > { %v366_v52 = vadd.f32 %v364_v42, %v335_v44  ;;  %v367_v53 = vadd.f32 %v365_v43, %v336_v45  ;;  %v523_v55 = vpop.permute.xlu0 %522  ;;  %v421_v62 = vsel %vm420_vm15, %v415_v35, %v417_v54  ;;  %v422_v3 = vsel %vm420_vm15, %v417_v54, %v419_v15 }
 0x12a   : > { %v526_v7 = vsel %vm524_vm0, %v521_v33, %v523_v55  ;;  %v609_v42 = vsub.s32 3, %v853_v34 }
 0x12b   : > { %v393_v58 = vadd.f32 %v391_v46, %v366_v52  ;;  %v394_v59 = vadd.f32 %v392_v47, %v367_v53  ;;  %v530_v13 = vsel %vm895_vm11, %v526_v7, 0.0 }
 0x12c   : > { %v505_v10 = vpop.permute.xlu1 %504  ;;  %v537_v23 = vmul.f32 %v879_v63, %v530_v13  ;;  %v593_v63 = vsub.s32 2, %v853_v34 }
 0x12d   : > { %v425_v5 = vadd.f32 %v421_v62, %v393_v58  ;;  %v426_v6 = vadd.f32 %v422_v3, %v394_v59  ;;  %v503_v11 = vpop.permute.xlu0 %502 }
 0x12e   : > { %v507_v16 = vsel %vm506_vm1, %v501_v26, %v503_v11  ;;  %v508_v17 = vsel %vm506_vm1, %v503_v11, %v505_v10 }
 0x12f   : > { %v452_v8 = vadd.f32 %v450_v60, %v425_v5  ;;  %v453_v9 = vadd.f32 %v451_v61, %v426_v6 }
 0x131   : > { %v479_v15 = vadd.f32 %v477_v21, %v452_v8  ;;  %v480_v12 = vadd.f32 %v478_v27, %v453_v9 }
 0x133   : > { %v511_v30 = vadd.f32 %v507_v16, %v479_v15  ;;  %v512_v2 = vadd.f32 %v508_v17, %v480_v12 }
 0x135   : > { %v538_v31 = vadd.f32 %v536_v22, %v511_v30  ;;  %v539_v33 = vadd.f32 %v537_v23, %v512_v2 }
 0x137   : > { %v545_v35 = vadd.f32 %v883_v1, %v538_v31  ;;  %v546_v24 = vadd.f32 %v883_v1, %v539_v33 }
 0x139   : > { %v547_v36 = vmax.f32 %v545_v35, 0.0  ;;  %v548_v37 = vmax.f32 %v546_v24, 0.0 }
 0x13b   : > { %v557_v18 = vrot.slane %v547_v36, %v556_v25  ;;  %v561_v19 = vrot.slane %v548_v37, %v556_v25  ;;  %v578_v29 = vrot.slane %v547_v36, %v577_v38  ;;  %v582_v40 = vrot.slane %v548_v37, %v577_v38 }
 0x13c   : > { %v594_v28 = vrot.slane %v547_v36, %v593_v63  ;;  %v598_v32 = vrot.slane %v548_v37, %v593_v63  ;;  %v610_v51 = vrot.slane %v547_v36, %v609_v42  ;;  %v614_v52 = vrot.slane %v548_v37, %v609_v42 }
 0x13d   : > { %v567_v14 = vpop.permute.xlu1 %566 }
 0x13e   : > { %v552_v20 = vpop.permute.xlu0 %551 }
 0x13f   : > { %v562_v39 = vmul.f32 %v557_v18, %v552_v20  ;;  %v563_v26 = vmul.f32 %v561_v19, %v552_v20 }
 0x141   : > { %v569_v43 = vadd.f32 %v567_v14, %v562_v39  ;;  %v570_v44 = vadd.f32 %v567_v14, %v563_v26 }
 0x142   : > { %v589_v41 = vpop.permute.xlu1 %588 }
 0x143   : > { %v573_v1 = vpop.permute.xlu0 %572  ;;  %v599_v47 = vmul.f32 %v594_v28, %v589_v41  ;;  %v600_v48 = vmul.f32 %v598_v32, %v589_v41 }
 0x144   : > { %v583_v45 = vmul.f32 %v578_v29, %v573_v1  ;;  %v584_v46 = vmul.f32 %v582_v40, %v573_v1 }
 0x146   : > { %v585_v49 = vadd.f32 %v583_v45, %v569_v43  ;;  %v586_v50 = vadd.f32 %v584_v46, %v570_v44 }
 0x147   : > { %v605_v53 = vpop.permute.xlu1 %604 }
 0x148   : > { %v601_v54 = vadd.f32 %v599_v47, %v585_v49  ;;  %v602_v55 = vadd.f32 %v600_v48, %v586_v50  ;;  %v615_v56 = vmul.f32 %v610_v51, %v605_v53  ;;  %v616_v57 = vmul.f32 %v614_v52, %v605_v53 }
 0x14a   : > { %v617_v58 = vadd.f32 %v615_v56, %v601_v54  ;;  %v618_v59 = vadd.f32 %v616_v57, %v602_v55 }
 0x14c   : > { %v619_v34 = vmax.f32 %v617_v58, 0.0  ;;  %v620_v60 = vmax.f32 %v618_v59, 0.0 }
 0x14e   : > { %621 = vst [vmem:[%s224_s12] sm:$0xff] %v619_v34  ;;  %622 = vst [vmem:[%s224_s12 + $0x8] sm:$0xff] %v620_v60 }
 0x14f PF: > { %s15_s18 = sadd.s32 1, %s727_s18  }
 0x150   : > { %p12_p4 = scmp.ge.s32.totalorder %s15_s18, 4  }
 0x152   :  { %14 = sbr.rel (!%p12_p4) target bundleno = 1 (0x1), region = 70 }

</bundles_post_ra>
